<compile_context>
chip_gen: v7x
topology: tpu7x:2x2x1
jax: 0.10.0
libtpu: 0.0.40
codegen_flags: <defaults>
</compile_context>

<pallas_src>
import functools

import jax
import jax.numpy as jnp
from jax.experimental import pallas as pl
from jax.experimental.pallas import tpu as pltpu


def _round_up(n, m):
    return ((n + m - 1) // m) * m


# --------------------------------------------------------------------------
# Kernel: one (batch-tile, time-step) grid point of the fused GRU sequence
# --------------------------------------------------------------------------
def _gru_seq_kernel(x_ref, h0_ref, w_ih_t_ref, w_hh_t_ref,
                    b_ih_ref, b_hh_ref, hy_ref, h_scratch, *, approx_sigmoid):
    """Refs (per grid point):

    x_ref:      (1, TB, I)    this timestep's input tile (unpadded feature dim)
    h0_ref:     (TB, H)       initial hidden state for this batch tile
    w_ih_t_ref: (I, Hp)       input projection, pre-transposed (compute dtype)
    w_hh_t_ref: (Hp, 3*Hp)    fused [r|i|n] hidden projection, pre-transposed
    b_ih_ref:   (1, Hp)       f32
    b_hh_ref:   (1, 3*Hp)     f32, fused [r|i|n]
    hy_ref:     (1, TB, Hp)   output hidden state for this timestep
    h_scratch:  (TB, Hp)      f32 carried hidden state (resident across T)
    """
    t = pl.program_id(1)
    H = h0_ref.shape[-1]
    Hp = h_scratch.shape[-1]
    cdt = w_ih_t_ref.dtype                       # MXU compute dtype (bf16/f32)

    @pl.when(t == 0)
    def _init():                                 # load h0 once per batch tile
        h0 = h0_ref[...].astype(jnp.float32)
        if H == Hp:
            h_scratch[...] = h0
        else:
            h_scratch[...] = jnp.zeros_like(h_scratch)
            h_scratch[:, :H] = h0                # padded lanes stay exactly 0

    h_f32 = h_scratch[...]                       # (TB, Hp) f32
    x_c = x_ref[0].astype(cdt)                   # (TB, I)
    h_c = h_f32.astype(cdt)

    # i_n = x @ W_ih^T + b_ih                    -> (TB, Hp), f32 accumulation
    i_n = jnp.dot(x_c, w_ih_t_ref[...],
                  preferred_element_type=jnp.float32) + b_ih_ref[...]
    # gh = h @ [W_hr | W_hi | W_hn]^T + b_hh     -> (TB, 3*Hp), single matmul
    gh = jnp.dot(h_c, w_hh_t_ref[...],
                 preferred_element_type=jnp.float32) + b_hh_ref[...]

    h_r = gh[:, 0 * Hp:1 * Hp]
    h_i = gh[:, 1 * Hp:2 * Hp]
    h_n = gh[:, 2 * Hp:3 * Hp]

    if approx_sigmoid:
        # exp -> EUP, approx reciprocal -> EUP: keeps the divide off the VPU
        # (helps most on v5e's single non-bf16 EUP).
        resetgate = pl.reciprocal(1.0 + jnp.exp(-h_r), approx=True)
        inputgate = pl.reciprocal(1.0 + jnp.exp(-h_i), approx=True)
    else:
        resetgate = jax.nn.sigmoid(h_r)
        inputgate = jax.nn.sigmoid(h_i)

    newgate = jnp.tanh(i_n + resetgate * h_n)
    hy = newgate + inputgate * (h_f32 - newgate)

    h_scratch[...] = hy                          # carry to next timestep
    hy_ref[0] = hy.astype(hy_ref.dtype)


# --------------------------------------------------------------------------
# pallas_call builder
# --------------------------------------------------------------------------
def _build_gru_call(*, T, Bp, TB, I, H, Hp, io_dtype, vmem_limit,
                    approx_sigmoid, single_buffer_weights):
    n_tiles = Bp // TB

    def resident(shape):
        """Constant-index operand: stays in VMEM across the whole grid."""
        idx = lambda b, t: (0,) * len(shape)
        if single_buffer_weights:
            # Single pipeline buffer: the block never changes, so a second
            # buffer is pure VMEM waste (matters on v7x's 64 MiB per-TC VMEM).
            return pl.BlockSpec(shape, idx, pipeline_mode=pl.Buffered(1))
        return pl.BlockSpec(shape, idx)

    # TODO(synk): for very large Hp (fused hidden weights > ~40 MiB on v7x),
    # add a third grid axis that tiles w_hh_t/b_hh over the 3*Hp column dim
    # with an f32 accumulator instead of keeping the fused weight resident.
    return pl.pallas_call(
        functools.partial(_gru_seq_kernel, approx_sigmoid=approx_sigmoid),
        out_shape=jax.ShapeDtypeStruct((T, Bp, Hp), io_dtype),
        grid_spec=pltpu.PrefetchScalarGridSpec(
            num_scalar_prefetch=0,
            grid=(n_tiles, T),                   # batch outer, time innermost
            in_specs=[
                pl.BlockSpec((1, TB, I), lambda b, t: (t, b, 0)),   # x[t]
                pl.BlockSpec((TB, H), lambda b, t: (b, 0)),         # h0
                resident((I, Hp)),                                  # W_ih^T
                resident((Hp, 3 * Hp)),                             # W_hh^T
                resident((1, Hp)),                                  # b_ih
                resident((1, 3 * Hp)),                              # b_hh
            ],
            out_specs=pl.BlockSpec((1, TB, Hp), lambda b, t: (t, b, 0)),
            scratch_shapes=[pltpu.VMEM((TB, Hp), jnp.float32)],     # carried h
        ),
        compiler_params=pltpu.CompilerParams(
            dimension_semantics=("parallel", "arbitrary"),
            vmem_limit_bytes=vmem_limit),
    )


# --------------------------------------------------------------------------
# Parameter preparation (call ONCE, not per timestep)
# --------------------------------------------------------------------------
def prepare_gru_params(weight_ih, weight_hh, bias_ih, bias_hh,
                       compute_dtype=jnp.bfloat16):
    """Pre-transpose, fuse and pad the weights once.

    Only the output (lane) dim is padded to a multiple of 128; contraction
    dims keep their true sizes so activations need no HBM-side padding.
    """
    H, I = weight_ih.shape
    Hp = _round_up(H, 128)

    w_ih_t = jnp.zeros((I, Hp), compute_dtype)
    w_ih_t = w_ih_t.at[:, :H].set(weight_ih.T.astype(compute_dtype))

    w_chunks, b_chunks = [], []
    for g in range(3):
        wg = weight_hh[g * H:(g + 1) * H, :].T                   # (H, H)
        wgp = jnp.zeros((Hp, Hp), compute_dtype).at[:H, :H].set(
            wg.astype(compute_dtype))
        w_chunks.append(wgp)
        bg = bias_hh[g * H:(g + 1) * H].astype(jnp.float32)
        b_chunks.append(jnp.zeros((Hp,), jnp.float32).at[:H].set(bg))

    w_hh_t = jnp.concatenate(w_chunks, axis=1)                   # (Hp, 3*Hp)
    b_hh = jnp.concatenate(b_chunks).reshape(1, 3 * Hp)
    b_ih = jnp.zeros((1, Hp), jnp.float32).at[0, :H].set(
        bias_ih.astype(jnp.float32))

    return {
        "w_ih_t": w_ih_t, "w_hh_t": w_hh_t, "b_ih": b_ih, "b_hh": b_hh,
        "H": H, "I": I, "Hp": Hp,
        # approx-EUP sigmoid only on the low-precision fast path.
        "approx_sigmoid": bool(jnp.dtype(compute_dtype) != jnp.dtype(jnp.float32)),
    }


# --------------------------------------------------------------------------
# VMEM budgeting (generation-aware)
# --------------------------------------------------------------------------
def _vmem_budget_bytes():
    """Usable per-core VMEM: physical capacity minus headroom."""
    try:
        cap = int(pltpu.get_tpu_info().vmem_capacity_bytes)
    except Exception:
        cap = 128 * 1024 * 1024
    # ~112 MiB usable on v5e/v6e (128 MiB), ~56 MiB on v7x (64 MiB/TC).
    return cap - max(cap // 8, 8 * 1024 * 1024)


def _vmem_estimate(TB, I, H, Hp, io_bytes, c_bytes, single_buffer_weights):
    wbuf = 1 if single_buffer_weights else 2
    weights = wbuf * ((I * Hp + Hp * 3 * Hp) * c_bytes + 4 * Hp * 4)
    acts = 2 * (TB * I + TB * H + TB * Hp) * io_bytes   # x / h0 / hy, dbl-buf
    carried = TB * Hp * 4                               # h scratch (f32)
    f32_tmp = 6 * TB * Hp * 4                           # gh(3*Hp) + i_n + gates
    return weights + acts + carried + f32_tmp


# --------------------------------------------------------------------------
# Forward wrappers
# --------------------------------------------------------------------------
def _as_2d(a):
    """Explicit leading-singleton handling (axis-less squeeze breaks B==1)."""
    if a.ndim == 3 and a.shape[0] == 1:
        return a[0]
    if a.ndim == 2:
        return a
    raise ValueError(f"expected (B, F) or (1, B, F), got {a.shape}")


def gru_sequence_forward(xs, h0, params, io_dtype=None):
    """Fused multi-step GRU: one pallas_call runs all T steps.

    xs: (T, B, input_size); h0: (B, hidden_size) or (1, B, hidden_size).
    Returns (hy_all of shape (T, B, H), h_T of shape (1, B, H)).
    """
    if xs.ndim != 3:
        raise ValueError(f"xs must be (T, B, input_size), got {xs.shape}")
    h0 = _as_2d(h0)
    T, B, I = xs.shape
    H, Hp = params["H"], params["Hp"]
    if I != params["I"] or h0.shape != (B, H):
        raise ValueError("input shapes do not match prepared params")

    if io_dtype is not None:                     # optional bf16 activation I/O
        xs = xs.astype(io_dtype)
    h0 = h0.astype(xs.dtype)
    io_bytes = jnp.dtype(xs.dtype).itemsize
    c_bytes = jnp.dtype(params["w_ih_t"].dtype).itemsize

    # ---- batch tiling (VMEM-budget- and megacore-aware) ---------------------
    budget = _vmem_budget_bytes()
    B8 = _round_up(B, 8)
    TB = min(B8, 512)                            # bigger tiles => HBM roofline
    if B8 >= 512 and B8 // TB < 2:               # give both v7x TCs a tile
        TB = _round_up((B8 + 1) // 2, 8)
    while TB > 8 and _vmem_estimate(TB, I, H, Hp, io_bytes, c_bytes, True) > budget:
        TB = max(8, _round_up(TB // 2, 8))
    Bp = _round_up(B, TB)

    # Pad the batch only when a ragged tile would appear; feature/contraction
    # dims are never padded in HBM (only the Hp output lane dim is padded).
    if Bp != B:
        xs_in = jnp.pad(xs, ((0, 0), (0, Bp - B), (0, 0)))
        h0_in = jnp.pad(h0, ((0, Bp - B), (0, 0)))
    else:
        xs_in, h0_in = xs, h0

    vmem_limit = int(min(
        budget,
        max(_vmem_estimate(TB, I, H, Hp, io_bytes, c_bytes, False) + (8 << 20),
            32 << 20)))

    common = dict(T=T, Bp=Bp, TB=TB, I=I, H=H, Hp=Hp, io_dtype=xs_in.dtype,
                  vmem_limit=vmem_limit,
                  approx_sigmoid=params["approx_sigmoid"])
    args = (xs_in, h0_in, params["w_ih_t"], params["w_hh_t"],
            params["b_ih"], params["b_hh"])
    try:
        hy_pad = _build_gru_call(single_buffer_weights=True, **common)(*args)
    except Exception:
        # This JAX/Mosaic build rejects pipeline_mode=pl.Buffered(1); fall back
        # to the default (double-buffered) resident weight specs.
        hy_pad = _build_gru_call(single_buffer_weights=False, **common)(*args)

    hy_all = hy_pad[:, :B, :H] if (Bp != B or Hp != H) else hy_pad
    return hy_all, hy_all[-1][None]


def gru_cell_forward(x, hidden, params, io_dtype=None):
    """Single GRUCell step (matches models/GRU_cell.py forward).

    x: (B, input_size) or (1, B, input_size); hidden likewise with hidden_size.
    Returns (None, hy) with hy of shape (1, B, hidden_size).
    """
    x2 = _as_2d(x)
    h2 = _as_2d(hidden)
    hy_all, _ = gru_sequence_forward(x2[None], h2, params, io_dtype=io_dtype)
    return None, hy_all


# --------------------------------------------------------------------------
# Pure-JAX references (mirror the PyTorch forward)
# --------------------------------------------------------------------------
def _reference_step(x, hidden, weight_ih, weight_hh, bias_ih, bias_hh,
                    compute_dtype=jnp.float32):
    x = _as_2d(x)
    hidden = _as_2d(hidden)
    H = weight_ih.shape[0]
    hid_f32 = hidden.astype(jnp.float32)
    i_n = jnp.dot(x.astype(compute_dtype), weight_ih.T.astype(compute_dtype),
                  preferred_element_type=jnp.float32) + bias_ih.astype(jnp.float32)
    gh = jnp.dot(hid_f32.astype(compute_dtype),
                 weight_hh.T.astype(compute_dtype),
                 preferred_element_type=jnp.float32) + bias_hh.astype(jnp.float32)
    h_r, h_i, h_n = gh[:, :H], gh[:, H:2 * H], gh[:, 2 * H:]
    resetgate = jax.nn.sigmoid(h_r)
    inputgate = jax.nn.sigmoid(h_i)
    newgate = jnp.tanh(i_n + resetgate * h_n)
    return (newgate + inputgate * (hid_f32 - newgate))[None]


def _reference_scan(xs, h0, weight_ih, weight_hh, bias_ih, bias_hh,
                    compute_dtype=jnp.float32):
    h = _as_2d(h0)
    outs = []
    for t in range(xs.shape[0]):
        h = _reference_step(xs[t], h, weight_ih, weight_hh, bias_ih, bias_hh,
                            compute_dtype)[0]
        outs.append(h)
    return jnp.stack(outs)


# --------------------------------------------------------------------------
if __name__ == "__main__":
    key = jax.random.PRNGKey(0)
    k1, k2, k3, k4, k5, k6, k7 = jax.random.split(key, 7)

    batch, input_size, hidden_size, seq_len = 8, 16, 32, 6

    weight_ih = jax.random.normal(k1, (hidden_size, input_size), jnp.float32)
    weight_hh = jax.random.normal(k2, (3 * hidden_size, hidden_size), jnp.float32)
    bias_ih = jax.random.normal(k3, (hidden_size,), jnp.float32)
    bias_hh = jax.random.normal(k4, (3 * hidden_size,), jnp.float32)

    x = jax.random.normal(k5, (1, batch, input_size), jnp.float32)
    h0 = jax.random.normal(k6, (1, batch, hidden_size), jnp.float32)
    xs = jax.random.normal(k7, (seq_len, batch, input_size), jnp.float32)

    # ---- single step, exact f32 compute (mirrors the torch module) ---------
    params_f32 = prepare_gru_params(weight_ih, weight_hh, bias_ih, bias_hh,
                                    compute_dtype=jnp.float32)
    _, hy32 = gru_cell_forward(x, h0, params_f32)
    hy32 = jax.block_until_ready(hy32)
    assert hy32.shape == (1, batch, hidden_size)
    ref32 = _reference_step(x, h0, weight_ih, weight_hh, bias_ih, bias_hh,
                            jnp.float32)
    assert jnp.allclose(hy32, ref32, atol=1e-5, rtol=1e-5), \
        "f32 kernel mismatch vs f32 reference"

    # ---- single step, bf16 fast path (bf16 MXU, f32 gates, approx sigmoid) --
    params_bf16 = prepare_gru_params(weight_ih, weight_hh, bias_ih, bias_hh,
                                     compute_dtype=jnp.bfloat16)
    _, hy16 = gru_cell_forward(x, h0, params_bf16)
    hy16 = jax.block_until_ready(hy16)
    ref16 = _reference_step(x, h0, weight_ih, weight_hh, bias_ih, bias_hh,
                            jnp.bfloat16)
    assert jnp.allclose(hy16, ref16, atol=5e-2, rtol=5e-2), \
        "bf16 kernel mismatch vs bf16 reference"

    # ---- fused sequence: one pallas_call, resident weights, VMEM-carried h --
    hy_all, h_T = gru_sequence_forward(xs, h0, params_f32)
    hy_all = jax.block_until_ready(hy_all)
    assert hy_all.shape == (seq_len, batch, hidden_size)
    assert h_T.shape == (1, batch, hidden_size)
    # Step 0 of the fused kernel must match the single-step kernel tightly.
    _, hy_step0 = gru_cell_forward(xs[0], h0, params_f32)
    assert jnp.allclose(hy_all[0][None], hy_step0, atol=1e-5, rtol=1e-5), \
        "fused-sequence step 0 mismatch vs single-step kernel"
    ref_all = _reference_scan(xs, h0, weight_ih, weight_hh, bias_ih, bias_hh,
                              jnp.float32)
    # Loose tolerance: MXU-vs-XLA f32 rounding diverges over recurrent steps.
    assert jnp.allclose(hy_all, ref_all, atol=5e-2, rtol=5e-2), \
        "fused-sequence mismatch vs reference scan"

    # ---- bf16 activation I/O path (halves HBM traffic), sanity check -------
    hy_all16, _ = gru_sequence_forward(xs, h0, params_bf16,
                                       io_dtype=jnp.bfloat16)
    hy_all16 = jax.block_until_ready(hy_all16)
    assert hy_all16.dtype == jnp.bfloat16
    assert bool(jnp.all(jnp.isfinite(hy_all16.astype(jnp.float32))))

    print("KERNEL_OK")
</pallas_src>

<mosaic_0001>
module attributes {stable_mosaic.version = 11 : i64} {
  func.func @_gru_seq_kernel(%arg0: i32, %arg1: i32, %arg2: memref<1x8x16xf32, #tpu.memory_space<vmem>>, %arg3: memref<8x32xf32, #tpu.memory_space<vmem>>, %arg4: memref<16x128xf32, #tpu.memory_space<vmem>>, %arg5: memref<128x384xf32, #tpu.memory_space<vmem>>, %arg6: memref<1x128xf32, #tpu.memory_space<vmem>>, %arg7: memref<1x384xf32, #tpu.memory_space<vmem>>, %arg8: memref<1x8x128xf32, #tpu.memory_space<vmem>>, %arg9: memref<8x128xf32, #tpu.memory_space<vmem>>) attributes {dimension_semantics = [#tpu.dimension_semantics<parallel>, #tpu.dimension_semantics<arbitrary>], iteration_bounds = array<i64: 1, 1>, scalar_prefetch = 0 : i64, scratch_operands = 1 : i64, tpu.core_type = #tpu.core_type<tc>, window_params = [{transform_indices = @transform_0, window_bounds = array<i64: 1, 8, 16>}, {transform_indices = @transform_1, window_bounds = array<i64: 8, 32>}, {pipeline_mode = #tpu.pipeline_mode<synchronous>, transform_indices = @transform_2, window_bounds = array<i64: 16, 128>}, {pipeline_mode = #tpu.pipeline_mode<synchronous>, transform_indices = @transform_3, window_bounds = array<i64: 128, 384>}, {pipeline_mode = #tpu.pipeline_mode<synchronous>, transform_indices = @transform_4, window_bounds = array<i64: 1, 128>}, {pipeline_mode = #tpu.pipeline_mode<synchronous>, transform_indices = @transform_5, window_bounds = array<i64: 1, 384>}, {transform_indices = @transform_6, window_bounds = array<i64: 1, 8, 128>}]} {
    %c0_i32 = arith.constant 0 : i32
    %0 = arith.cmpi eq, %arg1, %c0_i32 : i32
    %1 = arith.extui %0 : i1 to i32
    %c0_i32_0 = arith.constant 0 : i32
    %2 = arith.cmpi ne, %1, %c0_i32_0 : i32
    scf.if %2 {
      %c0_21 = arith.constant 0 : index
      %c0_22 = arith.constant 0 : index
      %39 = vector.load %arg3[%c0_21, %c0_22] : memref<8x32xf32, #tpu.memory_space<vmem>>, vector<8x32xf32>
      %cst_23 = arith.constant 0.000000e+00 : f32
      %40 = vector.broadcast %cst_23 : f32 to vector<8x128xf32>
      %c0_24 = arith.constant 0 : index
      %c0_25 = arith.constant 0 : index
      %41 = vector.load %arg9[%c0_24, %c0_25] : memref<8x128xf32, #tpu.memory_space<vmem>>, vector<8x128xf32>
      tpu.vector_store %arg9[%c0_24, %c0_25], %40 {strides = array<i32>} : memref<8x128xf32, #tpu.memory_space<vmem>>, vector<8x128xf32>,
      %c0_26 = arith.constant 0 : index
      %c0_27 = arith.constant 0 : index
      %42 = vector.load %arg9[%c0_26, %c0_27] : memref<8x128xf32, #tpu.memory_space<vmem>>, vector<8x32xf32>
      tpu.vector_store %arg9[%c0_26, %c0_27], %39 {strides = array<i32>} : memref<8x128xf32, #tpu.memory_space<vmem>>, vector<8x32xf32>,
    } else {
    }
    %c0 = arith.constant 0 : index
    %c0_1 = arith.constant 0 : index
    %3 = vector.load %arg9[%c0, %c0_1] : memref<8x128xf32, #tpu.memory_space<vmem>>, vector<8x128xf32>
    %c0_2 = arith.constant 0 : index
    %c0_3 = arith.constant 0 : index
    %c0_4 = arith.constant 0 : index
    %4 = vector.load %arg2[%c0_2, %c0_3, %c0_4] : memref<1x8x16xf32, #tpu.memory_space<vmem>>, vector<1x8x16xf32>
    %5 = vector.shape_cast %4 : vector<1x8x16xf32> to vector<8x16xf32>
    %c0_5 = arith.constant 0 : index
    %c0_6 = arith.constant 0 : index
    %6 = vector.load %arg4[%c0_5, %c0_6] : memref<16x128xf32, #tpu.memory_space<vmem>>, vector<16x128xf32>
    %cst = arith.constant dense<0.000000e+00> : vector<8x128xf32>
    %7 = tpu.matmul %5, %6, %cst {dimension_numbers = #tpu.dot_dimension_numbers<[1], [0], [0], [1], [0, 0, 1, 1], [], []>} : vector<8x16xf32>, vector<16x128xf32>, vector<8x128xf32> -> vector<8x128xf32>
    %c0_7 = arith.constant 0 : index
    %c0_8 = arith.constant 0 : index
    %8 = vector.load %arg6[%c0_7, %c0_8] : memref<1x128xf32, #tpu.memory_space<vmem>>, vector<1x128xf32>
    %9 = vector.broadcast %8 : vector<1x128xf32> to vector<8x128xf32>
    %10 = arith.addf %7, %9 : vector<8x128xf32>
    %c0_9 = arith.constant 0 : index
    %c0_10 = arith.constant 0 : index
    %11 = vector.load %arg5[%c0_9, %c0_10] : memref<128x384xf32, #tpu.memory_space<vmem>>, vector<128x384xf32>
    %cst_11 = arith.constant dense<0.000000e+00> : vector<8x384xf32>
    %12 = tpu.matmul %3, %11, %cst_11 {dimension_numbers = #tpu.dot_dimension_numbers<[1], [0], [0], [1], [0, 0, 1, 1], [], []>} : vector<8x128xf32>, vector<128x384xf32>, vector<8x384xf32> -> vector<8x384xf32>
    %c0_12 = arith.constant 0 : index
    %c0_13 = arith.constant 0 : index
    %13 = vector.load %arg7[%c0_12, %c0_13] : memref<1x384xf32, #tpu.memory_space<vmem>>, vector<1x384xf32>
    %14 = vector.broadcast %13 : vector<1x384xf32> to vector<8x384xf32>
    %15 = arith.addf %12, %14 : vector<8x384xf32>
    %16 = vector.extract_strided_slice %15 {offsets = [0, 0], sizes = [8, 128], strides = [1, 1]} : vector<8x384xf32> to vector<8x128xf32>
    %17 = vector.extract_strided_slice %15 {offsets = [0, 128], sizes = [8, 128], strides = [1, 1]} : vector<8x384xf32> to vector<8x128xf32>
    %18 = vector.extract_strided_slice %15 {offsets = [0, 256], sizes = [8, 128], strides = [1, 1]} : vector<8x384xf32> to vector<8x128xf32>
    %19 = arith.negf %16 : vector<8x128xf32>
    %20 = math.exp %19 : vector<8x128xf32>
    %cst_14 = arith.constant 1.000000e+00 : f32
    %21 = vector.broadcast %cst_14 : f32 to vector<8x128xf32>
    %22 = arith.addf %21, %20 : vector<8x128xf32>
    %23 = arith.divf %21, %22 : vector<8x128xf32>
    %24 = arith.negf %17 : vector<8x128xf32>
    %25 = math.exp %24 : vector<8x128xf32>
    %cst_15 = arith.constant 1.000000e+00 : f32
    %26 = vector.broadcast %cst_15 : f32 to vector<8x128xf32>
    %27 = arith.addf %26, %25 : vector<8x128xf32>
    %28 = arith.divf %26, %27 : vector<8x128xf32>
    %29 = arith.mulf %23, %18 : vector<8x128xf32>
    %30 = arith.addf %10, %29 : vector<8x128xf32>
    %31 = math.tanh %30 : vector<8x128xf32>
    %32 = arith.subf %3, %31 : vector<8x128xf32>
    %33 = arith.mulf %28, %32 : vector<8x128xf32>
    %34 = arith.addf %31, %33 : vector<8x128xf32>
    %c0_16 = arith.constant 0 : index
    %c0_17 = arith.constant 0 : index
    %35 = vector.load %arg9[%c0_16, %c0_17] : memref<8x128xf32, #tpu.memory_space<vmem>>, vector<8x128xf32>
    tpu.vector_store %arg9[%c0_16, %c0_17], %34 {strides = array<i32>} : memref<8x128xf32, #tpu.memory_space<vmem>>, vector<8x128xf32>,
    %c0_18 = arith.constant 0 : index
    %c0_19 = arith.constant 0 : index
    %c0_20 = arith.constant 0 : index
    %36 = vector.load %arg8[%c0_18, %c0_19, %c0_20] : memref<1x8x128xf32, #tpu.memory_space<vmem>>, vector<1x8x128xf32>
    %37 = vector.shape_cast %36 : vector<1x8x128xf32> to vector<8x128xf32>
    %38 = vector.shape_cast %34 : vector<8x128xf32> to vector<1x8x128xf32>
    tpu.vector_store %arg8[%c0_18, %c0_19, %c0_20], %38 {strides = array<i32>} : memref<1x8x128xf32, #tpu.memory_space<vmem>>, vector<1x8x128xf32>,
    return
  }
  func.func @transform_0(%arg0: i32, %arg1: i32) -> (i32, i32, i32) {
    %c0_i32 = arith.constant 0 : i32
    %c0_i32_0 = arith.constant 0 : i32
    return %arg1, %arg0, %c0_i32 : i32, i32, i32
  }
  func.func @transform_1(%arg0: i32, %arg1: i32) -> (i32, i32) {
    %c0_i32 = arith.constant 0 : i32
    %c0_i32_0 = arith.constant 0 : i32
    return %arg0, %c0_i32 : i32, i32
  }
  func.func @transform_2(%arg0: i32, %arg1: i32) -> (i32, i32) {
    %c0_i32 = arith.constant 0 : i32
    %c0_i32_0 = arith.constant 0 : i32
    %c0_i32_1 = arith.constant 0 : i32
    return %c0_i32, %c0_i32_0 : i32, i32
  }
  func.func @transform_3(%arg0: i32, %arg1: i32) -> (i32, i32) {
    %c0_i32 = arith.constant 0 : i32
    %c0_i32_0 = arith.constant 0 : i32
    %c0_i32_1 = arith.constant 0 : i32
    return %c0_i32, %c0_i32_0 : i32, i32
  }
  func.func @transform_4(%arg0: i32, %arg1: i32) -> (i32, i32) {
    %c0_i32 = arith.constant 0 : i32
    %c0_i32_0 = arith.constant 0 : i32
    %c0_i32_1 = arith.constant 0 : i32
    return %c0_i32, %c0_i32_0 : i32, i32
  }
  func.func @transform_5(%arg0: i32, %arg1: i32) -> (i32, i32) {
    %c0_i32 = arith.constant 0 : i32
    %c0_i32_0 = arith.constant 0 : i32
    %c0_i32_1 = arith.constant 0 : i32
    return %c0_i32, %c0_i32_0 : i32, i32
  }
  func.func @transform_6(%arg0: i32, %arg1: i32) -> (i32, i32, i32) {
    %c0_i32 = arith.constant 0 : i32
    %c0_i32_0 = arith.constant 0 : i32
    return %arg1, %arg0, %c0_i32 : i32, i32, i32
  }
}

module attributes {stable_mosaic.version = 11 : i64} {
  func.func @_gru_seq_kernel(%arg0: i32, %arg1: i32, %arg2: memref<1x8x16xf32, #tpu.memory_space<vmem>>, %arg3: memref<8x32xf32, #tpu.memory_space<vmem>>, %arg4: memref<16x128xf32, #tpu.memory_space<vmem>>, %arg5: memref<128x384xf32, #tpu.memory_space<vmem>>, %arg6: memref<1x128xf32, #tpu.memory_space<vmem>>, %arg7: memref<1x384xf32, #tpu.memory_space<vmem>>, %arg8: memref<1x8x128xf32, #tpu.memory_space<vmem>>, %arg9: memref<8x128xf32, #tpu.memory_space<vmem>>) attributes {dimension_semantics = [#tpu.dimension_semantics<parallel>, #tpu.dimension_semantics<arbitrary>], iteration_bounds = array<i64: 1, 1>, scalar_prefetch = 0 : i64, scratch_operands = 1 : i64, tpu.core_type = #tpu.core_type<tc>, window_params = [{transform_indices = @transform_0, window_bounds = array<i64: 1, 8, 16>}, {transform_indices = @transform_1, window_bounds = array<i64: 8, 32>}, {pipeline_mode = #tpu.pipeline_mode<synchronous>, transform_indices = @transform_2, window_bounds = array<i64: 16, 128>}, {pipeline_mode = #tpu.pipeline_mode<synchronous>, transform_indices = @transform_3, window_bounds = array<i64: 128, 384>}, {pipeline_mode = #tpu.pipeline_mode<synchronous>, transform_indices = @transform_4, window_bounds = array<i64: 1, 128>}, {pipeline_mode = #tpu.pipeline_mode<synchronous>, transform_indices = @transform_5, window_bounds = array<i64: 1, 384>}, {transform_indices = @transform_6, window_bounds = array<i64: 1, 8, 128>}]} {
    %c0_i32 = arith.constant 0 : i32
    %0 = arith.cmpi eq, %arg1, %c0_i32 : i32
    %1 = arith.extui %0 : i1 to i32
    %c0_i32_0 = arith.constant 0 : i32
    %2 = arith.cmpi ne, %1, %c0_i32_0 : i32
    scf.if %2 {
      %c0_21 = arith.constant 0 : index
      %c0_22 = arith.constant 0 : index
      %39 = vector.load %arg3[%c0_21, %c0_22] : memref<8x32xf32, #tpu.memory_space<vmem>>, vector<8x32xf32>
      %cst_23 = arith.constant 0.000000e+00 : f32
      %40 = vector.broadcast %cst_23 : f32 to vector<8x128xf32>
      %c0_24 = arith.constant 0 : index
      %c0_25 = arith.constant 0 : index
      %41 = vector.load %arg9[%c0_24, %c0_25] : memref<8x128xf32, #tpu.memory_space<vmem>>, vector<8x128xf32>
      tpu.vector_store %arg9[%c0_24, %c0_25], %40 {strides = array<i32>} : memref<8x128xf32, #tpu.memory_space<vmem>>, vector<8x128xf32>,
      %c0_26 = arith.constant 0 : index
      %c0_27 = arith.constant 0 : index
      %42 = vector.load %arg9[%c0_26, %c0_27] : memref<8x128xf32, #tpu.memory_space<vmem>>, vector<8x32xf32>
      tpu.vector_store %arg9[%c0_26, %c0_27], %39 {strides = array<i32>} : memref<8x128xf32, #tpu.memory_space<vmem>>, vector<8x32xf32>,
    } else {
    }
    %c0 = arith.constant 0 : index
    %c0_1 = arith.constant 0 : index
    %3 = vector.load %arg9[%c0, %c0_1] : memref<8x128xf32, #tpu.memory_space<vmem>>, vector<8x128xf32>
    %c0_2 = arith.constant 0 : index
    %c0_3 = arith.constant 0 : index
    %c0_4 = arith.constant 0 : index
    %4 = vector.load %arg2[%c0_2, %c0_3, %c0_4] : memref<1x8x16xf32, #tpu.memory_space<vmem>>, vector<1x8x16xf32>
    %5 = vector.shape_cast %4 : vector<1x8x16xf32> to vector<8x16xf32>
    %c0_5 = arith.constant 0 : index
    %c0_6 = arith.constant 0 : index
    %6 = vector.load %arg4[%c0_5, %c0_6] : memref<16x128xf32, #tpu.memory_space<vmem>>, vector<16x128xf32>
    %cst = arith.constant dense<0.000000e+00> : vector<8x128xf32>
    %7 = tpu.matmul %5, %6, %cst {dimension_numbers = #tpu.dot_dimension_numbers<[1], [0], [0], [1], [0, 0, 1, 1], [], []>} : vector<8x16xf32>, vector<16x128xf32>, vector<8x128xf32> -> vector<8x128xf32>
    %c0_7 = arith.constant 0 : index
    %c0_8 = arith.constant 0 : index
    %8 = vector.load %arg6[%c0_7, %c0_8] : memref<1x128xf32, #tpu.memory_space<vmem>>, vector<1x128xf32>
    %9 = vector.broadcast %8 : vector<1x128xf32> to vector<8x128xf32>
    %10 = arith.addf %7, %9 : vector<8x128xf32>
    %c0_9 = arith.constant 0 : index
    %c0_10 = arith.constant 0 : index
    %11 = vector.load %arg5[%c0_9, %c0_10] : memref<128x384xf32, #tpu.memory_space<vmem>>, vector<128x384xf32>
    %cst_11 = arith.constant dense<0.000000e+00> : vector<8x384xf32>
    %12 = tpu.matmul %3, %11, %cst_11 {dimension_numbers = #tpu.dot_dimension_numbers<[1], [0], [0], [1], [0, 0, 1, 1], [], []>} : vector<8x128xf32>, vector<128x384xf32>, vector<8x384xf32> -> vector<8x384xf32>
    %c0_12 = arith.constant 0 : index
    %c0_13 = arith.constant 0 : index
    %13 = vector.load %arg7[%c0_12, %c0_13] : memref<1x384xf32, #tpu.memory_space<vmem>>, vector<1x384xf32>
    %14 = vector.broadcast %13 : vector<1x384xf32> to vector<8x384xf32>
    %15 = arith.addf %12, %14 : vector<8x384xf32>
    %16 = vector.extract_strided_slice %15 {offsets = [0, 0], sizes = [8, 128], strides = [1, 1]} : vector<8x384xf32> to vector<8x128xf32>
    %17 = vector.extract_strided_slice %15 {offsets = [0, 128], sizes = [8, 128], strides = [1, 1]} : vector<8x384xf32> to vector<8x128xf32>
    %18 = vector.extract_strided_slice %15 {offsets = [0, 256], sizes = [8, 128], strides = [1, 1]} : vector<8x384xf32> to vector<8x128xf32>
    %19 = arith.negf %16 : vector<8x128xf32>
    %20 = math.exp %19 : vector<8x128xf32>
    %cst_14 = arith.constant 1.000000e+00 : f32
    %21 = vector.broadcast %cst_14 : f32 to vector<8x128xf32>
    %22 = arith.addf %21, %20 : vector<8x128xf32>
    %23 = arith.divf %21, %22 : vector<8x128xf32>
    %24 = arith.negf %17 : vector<8x128xf32>
    %25 = math.exp %24 : vector<8x128xf32>
    %cst_15 = arith.constant 1.000000e+00 : f32
    %26 = vector.broadcast %cst_15 : f32 to vector<8x128xf32>
    %27 = arith.addf %26, %25 : vector<8x128xf32>
    %28 = arith.divf %26, %27 : vector<8x128xf32>
    %29 = arith.mulf %23, %18 : vector<8x128xf32>
    %30 = arith.addf %10, %29 : vector<8x128xf32>
    %31 = math.tanh %30 : vector<8x128xf32>
    %32 = arith.subf %3, %31 : vector<8x128xf32>
    %33 = arith.mulf %28, %32 : vector<8x128xf32>
    %34 = arith.addf %31, %33 : vector<8x128xf32>
    %c0_16 = arith.constant 0 : index
    %c0_17 = arith.constant 0 : index
    %35 = vector.load %arg9[%c0_16, %c0_17] : memref<8x128xf32, #tpu.memory_space<vmem>>, vector<8x128xf32>
    tpu.vector_store %arg9[%c0_16, %c0_17], %34 {strides = array<i32>} : memref<8x128xf32, #tpu.memory_space<vmem>>, vector<8x128xf32>,
    %c0_18 = arith.constant 0 : index
    %c0_19 = arith.constant 0 : index
    %c0_20 = arith.constant 0 : index
    %36 = vector.load %arg8[%c0_18, %c0_19, %c0_20] : memref<1x8x128xf32, #tpu.memory_space<vmem>>, vector<1x8x128xf32>
    %37 = vector.shape_cast %36 : vector<1x8x128xf32> to vector<8x128xf32>
    %38 = vector.shape_cast %34 : vector<8x128xf32> to vector<1x8x128xf32>
    tpu.vector_store %arg8[%c0_18, %c0_19, %c0_20], %38 {strides = array<i32>} : memref<1x8x128xf32, #tpu.memory_space<vmem>>, vector<1x8x128xf32>,
    return
  }
  func.func @transform_0(%arg0: i32, %arg1: i32) -> (i32, i32, i32) {
    %c0_i32 = arith.constant 0 : i32
    %c0_i32_0 = arith.constant 0 : i32
    return %arg1, %arg0, %c0_i32 : i32, i32, i32
  }
  func.func @transform_1(%arg0: i32, %arg1: i32) -> (i32, i32) {
    %c0_i32 = arith.constant 0 : i32
    %c0_i32_0 = arith.constant 0 : i32
    return %arg0, %c0_i32 : i32, i32
  }
  func.func @transform_2(%arg0: i32, %arg1: i32) -> (i32, i32) {
    %c0_i32 = arith.constant 0 : i32
    %c0_i32_0 = arith.constant 0 : i32
    %c0_i32_1 = arith.constant 0 : i32
    return %c0_i32, %c0_i32_0 : i32, i32
  }
  func.func @transform_3(%arg0: i32, %arg1: i32) -> (i32, i32) {
    %c0_i32 = arith.constant 0 : i32
    %c0_i32_0 = arith.constant 0 : i32
    %c0_i32_1 = arith.constant 0 : i32
    return %c0_i32, %c0_i32_0 : i32, i32
  }
  func.func @transform_4(%arg0: i32, %arg1: i32) -> (i32, i32) {
    %c0_i32 = arith.constant 0 : i32
    %c0_i32_0 = arith.constant 0 : i32
    %c0_i32_1 = arith.constant 0 : i32
    return %c0_i32, %c0_i32_0 : i32, i32
  }
  func.func @transform_5(%arg0: i32, %arg1: i32) -> (i32, i32) {
    %c0_i32 = arith.constant 0 : i32
    %c0_i32_0 = arith.constant 0 : i32
    %c0_i32_1 = arith.constant 0 : i32
    return %c0_i32, %c0_i32_0 : i32, i32
  }
  func.func @transform_6(%arg0: i32, %arg1: i32) -> (i32, i32, i32) {
    %c0_i32 = arith.constant 0 : i32
    %c0_i32_0 = arith.constant 0 : i32
    return %arg1, %arg0, %c0_i32 : i32, i32, i32
  }
}

</mosaic_0001>

<bundles_post_ra>
// kernel: tpu_custom_call.1
= control target key start
LH: loop header
LB: loop body
LE: loop exit
PB: predicated region body
PF: predicated region fallthrough
CT: control target
= control target key end

     0   :  { %11 = vsyncpa [#allocation4], 0  ;;  %s800_s0 = inlined_call_operand.hbm [shape: f32[1,8,16], index: 0, kind: input, shape index: {}]   ;;  %s801_s1 = inlined_call_operand.hbm [shape: f32[8,32], index: 1, kind: input, shape index: {}]   ;;  %s802_s2 = inlined_call_operand.hbm [shape: f32[16,128], index: 2, kind: input, shape index: {}]   ;;  %s803_s3 = inlined_call_operand.hbm [shape: f32[128,384], index: 3, kind: input, shape index: {}]   ;;  %s804_s4 = inlined_call_operand.vmem [shape: f32[1,128], index: 4, kind: input, shape index: {}]   ;;  %s805_s5 = inlined_call_operand.vmem [shape: f32[1,384], index: 5, kind: input, shape index: {}]   ;;  %s806_s6 = inlined_call_operand.hbm [shape: f32[1,8,128], index: 6, kind: output, shape index: {}]  }
   0x1   :  { %12 = vsyncpa [#allocation7], 0 }
   0x2   :  { %13 = vsyncpa [#allocation10], 0 }
   0x3   :  { %14 = vsyncpa [#allocation5], 0  ;;  %s676_s21 = smov [#allocation6]   ;;  %s677_s23 = smov [#allocation3]  }
   0x4   :  { %s31_s22 = sshll.u32 %s676_s21, 4  ;;  %s21_s24 = sshll.u32 %s677_s23, 4  ;;  %s32_s22 = int_to_ptr.vmem [resolvable:$true] %s31_s22  ;;  %s22_s24 = int_to_ptr.vmem [resolvable:$true] %s21_s24 }
   0x5   :  { %s558_s27 = scalar_lea.hbm %s801_s1, 128 }
   0x6   :  { %p559_p0 = scmp.ne.s32.totalorder %s801_s1, %s558_s27  ;;  %p562_p1 = scmp.lt.u32.totalorder %s558_s27, %s801_s1 }
   0x8   :  { %p564_p2 = pnand %p562_p1, %p559_p0 }
   0xa   :  { %567 = shalt.err (!%p564_p2)
}
   0xb   :  { %s568_s8 = scalar_lea.vmem %s32_s22, 128  ;;  %p573_p4 = scmp.lt.s32.totalorder %s32_s22, %s32_s22 }
   0xc   :  { %p569_p3 = scmp.ne.s32.totalorder %s32_s22, %s568_s8  ;;  %p574_p5 = scmp.lt.s32.totalorder %s568_s8, %s568_s8 }
   0xe   :  { %p575_p6 = por %p574_p5, %p573_p4 }
  0x10   :  { %p576_p7 = pnand %p575_p6, %p569_p3 }
  0x12   :  { %579 = shalt.err (!%p576_p7)
}
  0x13   :  { %34 = dma.hbm_to_vmem [thread:$0]  %s801_s1, 128, %s32_s22, [#allocation7]  }
  0x14   :  { %s580_s13 = scalar_lea.hbm %s800_s0, 128 }
  0x15   :  { %p581_p8 = scmp.ne.s32.totalorder %s800_s0, %s580_s13  ;;  %p584_p9 = scmp.lt.u32.totalorder %s580_s13, %s800_s0 }
  0x17   :  { %p586_p10 = pnand %p584_p9, %p581_p8 }
  0x19   :  { %589 = shalt.err (!%p586_p10)
}
  0x1a   :  { %s590_s18 = scalar_lea.vmem %s22_s24, 128  ;;  %p595_p12 = scmp.lt.s32.totalorder %s22_s24, %s22_s24 }
  0x1b   :  { %p591_p11 = scmp.ne.s32.totalorder %s22_s24, %s590_s18  ;;  %p596_p13 = scmp.lt.s32.totalorder %s590_s18, %s590_s18 }
  0x1d   :  { %p597_p0 = por %p596_p13, %p595_p12 }
  0x1f   :  { %p598_p1 = pnand %p597_p0, %p591_p11 }
  0x21   :  { %601 = shalt.err (!%p598_p1)
}
  0x22   :  { %24 = dma.hbm_to_vmem [thread:$0]  %s800_s0, 128, %s22_s24, [#allocation4]  }
  0x23   :  { %s678_s20 = smov [#allocation8]   ;;  %s602_s25 = scalar_lea.hbm %s802_s2, 256 }
  0x24   :  { %s40_s21 = sshll.u32 %s678_s20, 4  ;;  %p603_p2 = scmp.ne.s32.totalorder %s802_s2, %s602_s25  ;;  %s41_s21 = int_to_ptr.vmem [resolvable:$true] %s40_s21 }
  0x25   :  { %p606_p3 = scmp.lt.u32.totalorder %s602_s25, %s802_s2 }
  0x27   :  { %p608_p4 = pnand %p606_p3, %p603_p2 }
  0x29   :  { %611 = shalt.err (!%p608_p4)
}
  0x2a   :  { %s612_s30 = scalar_lea.vmem %s41_s21, 256  ;;  %p617_p6 = scmp.lt.s32.totalorder %s41_s21, %s41_s21 }
  0x2b   :  { %p613_p5 = scmp.ne.s32.totalorder %s41_s21, %s612_s30  ;;  %p618_p7 = scmp.lt.s32.totalorder %s612_s30, %s612_s30 }
  0x2d   :  { %p619_p8 = por %p618_p7, %p617_p6 }
  0x2f   :  { %p620_p9 = pnand %p619_p8, %p613_p5 }
  0x31   :  { %623 = shalt.err (!%p620_p9)
}
  0x32   :  { %s679_s0 = smov 128   ;;  %s680_s24 = smov 8  }
  0x33   :  { %46 = dma.hbm_to_vmem [thread:$0]  %s802_s2, 256, %s41_s21, [#allocation7], %s679_s0, %s679_s0, %s680_s24  }
  0x34   :  { %s681_s9 = smov [#allocation9]   ;;  %s624_s13 = scalar_lea.hbm %s803_s3, 6144 }
  0x35   :  { %s52_s10 = sshll.u32 %s681_s9, 4  ;;  %p625_p10 = scmp.ne.s32.totalorder %s803_s3, %s624_s13  ;;  %s53_s10 = int_to_ptr.vmem [resolvable:$true] %s52_s10 }
  0x36   :  { %p628_p11 = scmp.lt.u32.totalorder %s624_s13, %s803_s3 }
  0x38   :  { %p630_p12 = pnand %p628_p11, %p625_p10 }
  0x3a   :  { %633 = shalt.err (!%p630_p12)
}
  0x3b   :  { %s634_s18 = scalar_lea.vmem %s53_s10, 6144  ;;  %p639_p0 = scmp.lt.s32.totalorder %s53_s10, %s53_s10 }
  0x3c   :  { %p635_p13 = scmp.ne.s32.totalorder %s53_s10, %s634_s18  ;;  %p640_p1 = scmp.lt.s32.totalorder %s634_s18, %s634_s18 }
  0x3e   :  { %p641_p2 = por %p640_p1, %p639_p0 }
  0x40   :  { %p642_p3 = pnand %p641_p2, %p635_p13 }
  0x42   :  { %645 = shalt.err (!%p642_p3)
}
  0x43   :  { %s682_s2 = smov 384   ;;  %s683_s1 = smov 24  }
  0x44   :  { %58 = dma.hbm_to_vmem [thread:$0]  %s803_s3, 6144, %s53_s10, [#allocation10], %s682_s2, %s682_s2, %s683_s1  }
  0x45   :  { %668 = dma.done.wait [#allocation4], 128  }
  0x46   :  { %669 = vsyncadd [#allocation4], 4294967168 }
  0x47   :  { %670 = dma.done.wait [#allocation7], 384  }
  0x48   :  { %671 = vsyncadd [#allocation7], 4294966912 }
  0x49   :  { %672 = dma.done.wait [#allocation10], 6144  }
  0x4a   :  { %673 = vsyncadd [#allocation10], 4294961152  ;;  %v684_v0 = vmov 0.0|0.0   ;;  %v685_v1 = vmov 0.0   ;;  %vm686_vm0 = vmmov 0   ;;  %v169_v2 = vld [vmem:[#allocation9 + $0x8] sm:$0xff] }
  0x4b   :  { %477 = vmatprep.subr.bf16.mxu0 %v684_v0  ;;  %80 = vst [vmem:[#allocation2] sm:$0xff] %v685_v1  ;;  %439 = vmatprep.mubr.msk.f32.mxu0 %vm686_vm0, %v685_v1  ;;  %v172_v3 = vld [vmem:[#allocation9 + $0x20] sm:$0xff]  ;;  %v171_v6 = vld [vmem:[#allocation9 + $0x18] sm:$0xff]  ;;  %v178_v8 = vld [vmem:[#allocation9 + $0x50] sm:$0xff]  ;;  %vm81_vm1 = vcmask 261120   ;;  %vm94_vm2 = vcmask 130048  }
  0x4c   :  { %297 = vmatprep.mubr.f32.mxu1 %v685_v1  ;;  %v168_v4 = vld [vmem:[#allocation9] sm:$0xff]  ;;  %v480_v5 = vpack.c.bf16 %v172_v3, %v169_v2  ;;  %v175_v7 = vld [vmem:[#allocation9 + $0x38] sm:$0xff]  ;;  %v174_v11 = vld [vmem:[#allocation9 + $0x30] sm:$0xff]  ;;  %s687_s23 = smov [#allocation11]  }
  0x4d   :  { %v482_v9 = vpack.c.bf16 %v171_v6, %v168_v4  ;;  %v484_v10 = vpack.c.bf16 %v178_v8, %v175_v7  ;;  %v177_v12 = vld [vmem:[#allocation9 + $0x48] sm:$0xff]  ;;  %v184_v14 = vld [vmem:[#allocation9 + $0x80] sm:$0xff]  ;;  %v183_v18 = vld [vmem:[#allocation9 + $0x78] sm:$0xff]  ;;  %s400_s25 = sshll.u32 %s687_s23, 4  ;;  %s401_s25 = int_to_ptr.vmem [resolvable:$true] %s400_s25 }
  0x4e   :  { %v181_v13 = vld [vmem:[#allocation9 + $0x68] sm:$0xff]  ;;  %481 = vmatprep.subr.bf16.mxu1 %v480_v5  ;;  %v486_v15 = vpack.c.bf16 %v177_v12, %v174_v11  ;;  %v180_v17 = vld [vmem:[#allocation9 + $0x60] sm:$0xff]  ;;  %v187_v19 = vld [vmem:[#allocation9 + $0x98] sm:$0xff]  ;;  %s646_s26 = scalar_lea.vmem %s401_s25, 128  ;;  %p651_p5 = scmp.lt.s32.totalorder %s401_s25, %s401_s25 }
  0x4f   :  { %483 = vmatpush1.bf16.msra.mxu1 %v482_v9  ;;  %v488_v16 = vpack.c.bf16 %v184_v14, %v181_v13  ;;  %v190_v20 = vld [vmem:[#allocation9 + $0xb0] sm:$0xff]  ;;  %v490_v21 = vpack.c.bf16 %v183_v18, %v180_v17  ;;  %v86_v23 = vld [vmem:[#allocation8 + $0x8] sm:$0xff]  ;;  %v189_v26 = vld [vmem:[#allocation9 + $0xa8] sm:$0xff]  ;;  %p647_p4 = scmp.ne.s32.totalorder %s401_s25, %s646_s26  ;;  %p652_p6 = scmp.lt.s32.totalorder %s646_s26, %s646_s26 }
  0x50   :  { %485 = vmatprep.subr.bf16.mxu1 %v484_v10  ;;  %v85_v22 = vld [vmem:[#allocation8] sm:$0xff]  ;;  %v492_v24 = vpack.c.bf16 %v190_v20, %v187_v19  ;;  %v79_v28 = vld [vmem:[#allocation6] sm:$0xff]  ;;  %v196_v30 = vld [vmem:[#allocation9 + $0xe0] sm:$0xff]  ;;  %v218_v19 = vlaneseq }
  0x51   :  { %v186_v25 = vld [vmem:[#allocation9 + $0x90] sm:$0xff]  ;;  %v478_v27 = vpack.c.bf16 %v86_v23, %v85_v22  ;;  %v193_v29 = vld [vmem:[#allocation9 + $0xc8] sm:$0xff]  ;;  %82 = vst.msk [vmem:[#allocation2] sm:$0xff] %vm81_vm1, %v79_v28  ;;  %v84_v32 = vld [vmem:[#allocation3] sm:$0xff]  ;;  %p653_p7 = por %p652_p6, %p651_p5 }
  0x52   :  { %v170_v31 = vld [vmem:[#allocation9 + $0x10] sm:$0xff]  ;;  %v173_v33 = vld [vmem:[#allocation9 + $0x28] sm:$0xff]  ;;  %v494_v34 = vpack.c.bf16 %v189_v26, %v186_v25  ;;  %v176_v36 = vld [vmem:[#allocation9 + $0x40] sm:$0xff]  ;;  %v496_v37 = vpack.c.bf16 %v196_v30, %v193_v29  ;;  %v219_v20 = vshrl.u32 %v218_v19, 7 }
  0x53   :  { %487 = vmatpush1.bf16.msra.mxu1 %v486_v15  ;;  %479 = vmatpush3.bf16.msra.mxu0 %v478_v27  ;;  %v513_v35 = vpack.c.bf16 %v173_v33, %v170_v31  ;;  %v192_v38 = vld [vmem:[#allocation9 + $0xc0] sm:$0xff]  ;;  %v195_v39 = vld [vmem:[#allocation9 + $0xd8] sm:$0xff]  ;;  %v202_v42 = vld [vmem:[#allocation9 + $0x110] sm:$0xff]  ;;  %p654_p8 = pnand %p653_p7, %p647_p4 }
  0x54   :  { %489 = vmatprep.subr.bf16.mxu1 %v488_v16  ;;  %512 = vmatprep.subr.bf16.mxu0 %v684_v0  ;;  %v179_v40 = vld [vmem:[#allocation9 + $0x58] sm:$0xff]  ;;  %v498_v44 = vpack.c.bf16 %v195_v39, %v192_v38  ;;  %v182_v45 = vld [vmem:[#allocation9 + $0x70] sm:$0xff]  ;;  %v185_v46 = vld [vmem:[#allocation9 + $0x88] sm:$0xff]  ;;  %v224_v26 = vsub.s32 1, %v219_v20 }
  0x55   :  { %v199_v41 = vld [vmem:[#allocation9 + $0xf8] sm:$0xff]  ;;  %v516_v43 = vpack.c.bf16 %v179_v40, %v176_v36  ;;  %v198_v48 = vld [vmem:[#allocation9 + $0xf0] sm:$0xff]  ;;  %v201_v49 = vld [vmem:[#allocation9 + $0x108] sm:$0xff]  ;;  %v519_v52 = vpack.c.bf16 %v185_v46, %v182_v45 }
  0x56   :  { %440 = vmatmul.mubr.msk.f32.vlgmr.msra.gmra.mrb[0].mxu0 %vm94_vm2, %v84_v32  ;;  %v500_v47 = vpack.c.bf16 %v202_v42, %v199_v41  ;;  %v205_v50 = vld [vmem:[#allocation9 + $0x128] sm:$0xff]  ;;  %v208_v51 = vld [vmem:[#allocation9 + $0x140] sm:$0xff]  ;;  %v502_v53 = vpack.c.bf16 %v201_v49, %v198_v48  ;;  %v191_v55 = vld [vmem:[#allocation9 + $0xb8] sm:$0xff] }
  0x57   :  { %491 = vmatpush1.bf16.msra.mxu1 %v490_v21  ;;  %514 = vmatpush3.bf16.msra.mxu0 %v513_v35  ;;  %v188_v54 = vld [vmem:[#allocation9 + $0xa0] sm:$0xff]  ;;  %v504_v56 = vpack.c.bf16 %v208_v51, %v205_v50  ;;  %v207_v58 = vld [vmem:[#allocation9 + $0x138] sm:$0xff]  ;;  %v214_v60 = vld [vmem:[#allocation9 + $0x170] sm:$0xff]  ;;  %v220_v21 = vsub.s32 0, %v219_v20  ;;  %v228_v35 = vsub.s32 2, %v219_v20 }
  0x58   :  { %493 = vmatprep.subr.bf16.mxu1 %v492_v24  ;;  %474 = vmatprep.mubr.msk.f32.mxu0 %vm686_vm0, %v685_v1  ;;  %v204_v57 = vld [vmem:[#allocation9 + $0x120] sm:$0xff]  ;;  %v211_v59 = vld [vmem:[#allocation9 + $0x158] sm:$0xff]  ;;  %v522_v61 = vpack.c.bf16 %v191_v55, %v188_v54  ;;  %v194_v63 = vld [vmem:[#allocation9 + $0xd0] sm:$0xff] }
  0x59   :  { %515 = vmatprep.subr.bf16.mxu0 %v684_v0  ;;  %v506_v62 = vpack.c.bf16 %v207_v58, %v204_v57  ;;  %v197_v1 = vld [vmem:[#allocation9 + $0xe8] sm:$0xff]  ;;  %v508_v2 = vpack.c.bf16 %v214_v60, %v211_v59  ;;  %v210_v3 = vld [vmem:[#allocation9 + $0x150] sm:$0xff]  ;;  %v200_v7 = vld [vmem:[#allocation9 + $0x100] sm:$0xff] }
  0x5a   :  { %v213_v4 = vld [vmem:[#allocation9 + $0x168] sm:$0xff]  ;;  %v525_v5 = vpack.c.bf16 %v197_v1, %v194_v63  ;;  %v203_v8 = vld [vmem:[#allocation9 + $0x118] sm:$0xff]  ;;  %v206_v11 = vld [vmem:[#allocation9 + $0x130] sm:$0xff] }
  0x5b   :  { %495 = vmatpush1.bf16.msra.mxu1 %v494_v34  ;;  %517 = vmatpush3.bf16.msra.mxu0 %v516_v43  ;;  %v510_v6 = vpack.c.bf16 %v213_v4, %v210_v3  ;;  %v528_v9 = vpack.c.bf16 %v203_v8, %v200_v7  ;;  %v83_v10 = vld [vmem:[#allocation2] sm:$0xff]  ;;  %v209_v12 = vld [vmem:[#allocation9 + $0x148] sm:$0xff]  ;;  %v212_v14 = vld [vmem:[#allocation9 + $0x160] sm:$0xff] }
  0x5c   :  { %497 = vmatprep.subr.bf16.mxu1 %v496_v37  ;;  %518 = vmatprep.subr.bf16.mxu0 %v684_v0  ;;  %v531_v13 = vpack.c.bf16 %v209_v12, %v206_v11  ;;  %v215_v15 = vld [vmem:[#allocation9 + $0x178] sm:$0xff] }
  0x5d   :  { %v534_v16 = vpack.c.bf16 %v215_v15, %v212_v14  ;;  %v216_v22 = vld [vmem:[%s805_s5] sm:$0x7] }
  0x5e   :  { %v221_v23 = vrot.slane %v216_v22, %v220_v21  ;;  %v225_v29 = vrot.slane %v216_v22, %v224_v26  ;;  %v229_v36 = vrot.slane %v216_v22, %v228_v35  ;;  %v411_v38 = vld [vmem:[%s804_s4] ss:$0 sm:$0xff] }
  0x5f   :  { %499 = vmatpush1.bf16.msra.mxu1 %v498_v44  ;;  %520 = vmatpush3.bf16.msra.mxu0 %v519_v52 }
  0x60   :  { %501 = vmatprep.subr.bf16.mxu1 %v500_v47  ;;  %521 = vmatprep.subr.bf16.mxu0 %v684_v0 }
  0x63   :  { %503 = vmatpush1.bf16.msra.mxu1 %v502_v53  ;;  %523 = vmatpush3.bf16.msra.mxu0 %v522_v61 }
  0x64   :  { %505 = vmatprep.subr.bf16.mxu1 %v504_v56  ;;  %524 = vmatprep.subr.bf16.mxu0 %v684_v0 }
  0x67   :  { %507 = vmatpush1.bf16.msra.mxu1 %v506_v62  ;;  %526 = vmatpush3.bf16.msra.mxu0 %v525_v5 }
  0x68   :  { %509 = vmatprep.subr.bf16.mxu1 %v508_v2  ;;  %527 = vmatprep.subr.bf16.mxu0 %v684_v0 }
  0x6b   :  { %511 = vmatpush1.bf16.msra.mxu1 %v510_v6  ;;  %529 = vmatpush3.bf16.msra.mxu0 %v528_v9 }
  0x6c   :  { %530 = vmatprep.subr.bf16.mxu0 %v684_v0 }
  0x6e   :  { %298 = vmatmul.mubr.f32.vlgmr.msra.gmra.mrb[0].mxu1 %v83_v10 }
  0x6f   :  { %532 = vmatpush3.bf16.msra.mxu0 %v531_v13 }
  0x70   :  { %533 = vmatprep.subr.bf16.mxu0 %v684_v0 }
  0x73   :  { %535 = vmatpush3.bf16.msra.mxu0 %v534_v16 }
  0x76   :  { %475 = vmatmul.mubr.f32.vlgmr.msra.gmra.mrb[2].mxu0 %v83_v10 }
 0x129   :  { %v164_v17 = vpop.f32.mrb[0].mxu0 }
 0x12a   :  { %v441_v18 = vpop.f32.mrb[1].mxu0  ;;  %v165_v41 = vadd.f32 %v411_v38, %v164_v17 }
 0x141   :  { %v299_v24 = vpop.f32.mrb[0].mxu1 }
 0x142   :  { %v300_v25 = vadd.f32 %v299_v24, %v221_v23  ;;  %v301_v27 = vpop.f32.mrb[1].mxu1 }
 0x143   :  { %v302_v0 = vadd.f32 %v301_v27, %v225_v29 }
 0x144   :  { %v413_v28 = vmul.f32 -1.442695, %v300_v25 }
 0x145   :  { %v414_v32 = vmul.f32 -1.442695, %v302_v0 }
 0x146   :  { %548 = vpow2.f32 %v413_v28 }
 0x147   :  { %550 = vpow2.f32 %v414_v32 }
 0x149   :  { %v370_v30 = vpop.f32.mrb[2].mxu0 }
 0x14a   :  { %v476_v31 = vpop.f32.mrb[3].mxu0  ;;  %v371_v37 = vadd.f32 %v370_v30, %v229_v36 }
 0x150   :  { %v549_v33 = vpop.eup %548 }
 0x151   :  { %v377_v34 = vadd.f32 1.0, %v549_v33  ;;  %v551_v39 = vpop.eup %550 }
 0x152   :  { %v383_v43 = vadd.f32 1.0, %v551_v39 }
 0x153   :  { %552 = vrcp.f32 %v377_v34 }
 0x15d   :  { %v553_v40 = vpop.eup %552 }
 0x15e   :  { %v386_v42 = vmul.f32 %v553_v40, %v371_v37 }
 0x160   :  { %v387_v44 = vadd.f32 %v386_v42, %v165_v41 }
 0x162   :  { %554 = vtanh.f32 %v387_v44 }
 0x163   :  { %556 = vrcp.f32 %v383_v43 }
 0x16c   :  { %v555_v45 = vpop.eup %554 }
 0x16d   :  { %v389_v46 = vsub.f32 %v83_v10, %v555_v45  ;;  %v557_v47 = vpop.eup %556 }
 0x16f   :  { %v390_v48 = vmul.f32 %v557_v47, %v389_v46 }
 0x171   :  { %v391_v49 = vadd.f32 %v555_v45, %v390_v48 }
 0x173   :  { %392 = vst [vmem:[#allocation2] sm:$0xff] %v391_v49  ;;  %393 = vst [vmem:[#allocation11] sm:$0xff] %v391_v49 }
 0x174   :  { %657 = shalt.err (!%p654_p8)
}
 0x175   :  { %s658_s28 = scalar_lea.hbm %s806_s6, 128 }
 0x176   :  { %p659_p9 = scmp.ne.s32.totalorder %s806_s6, %s658_s28  ;;  %p662_p10 = scmp.lt.u32.totalorder %s658_s28, %s806_s6 }
 0x178   :  { %p664_p11 = pnand %p662_p10, %p659_p9 }
 0x17a   :  { %667 = shalt.err (!%p664_p11)
}
 0x17b   :  { %403 = dma.vmem_to_hbm [thread:$0]  %s401_s25, 128, %s806_s6, [#allocation5]  }
 0x17c   :  { %674 = dma.done.wait [#allocation5], 128  }
 0x17d   :  { %675 = vsyncadd [#allocation5], 4294967168 }
 0x17e   :  { %407 = vsyncpa [#allocation4], 1 }
 0x17f   :  { %408 = vsyncpa [#allocation7], 1 }
 0x180   :  { %409 = vsyncpa [#allocation10], 1 }
 0x181   :  { %410 = vsyncpa [#allocation5], 1 }

// kernel: tpu_custom_call.1
= control target key start
LH: loop header
LB: loop body
LE: loop exit
PB: predicated region body
PF: predicated region fallthrough
CT: control target
= control target key end

     0   :  { %11 = vsyncpa [#allocation4], 0  ;;  %s800_s0 = inlined_call_operand.hbm [shape: f32[1,8,16], index: 0, kind: input, shape index: {}]   ;;  %s801_s1 = inlined_call_operand.hbm [shape: f32[8,32], index: 1, kind: input, shape index: {}]   ;;  %s802_s2 = inlined_call_operand.hbm [shape: f32[16,128], index: 2, kind: input, shape index: {}]   ;;  %s803_s3 = inlined_call_operand.hbm [shape: f32[128,384], index: 3, kind: input, shape index: {}]   ;;  %s804_s4 = inlined_call_operand.vmem [shape: f32[1,128], index: 4, kind: input, shape index: {}]   ;;  %s805_s5 = inlined_call_operand.vmem [shape: f32[1,384], index: 5, kind: input, shape index: {}]   ;;  %s806_s6 = inlined_call_operand.hbm [shape: f32[1,8,128], index: 6, kind: output, shape index: {}]  }
   0x1   :  { %12 = vsyncpa [#allocation7], 0 }
   0x2   :  { %13 = vsyncpa [#allocation10], 0 }
   0x3   :  { %14 = vsyncpa [#allocation5], 0  ;;  %s676_s21 = smov [#allocation6]   ;;  %s677_s23 = smov [#allocation3]  }
   0x4   :  { %s31_s22 = sshll.u32 %s676_s21, 4  ;;  %s21_s24 = sshll.u32 %s677_s23, 4  ;;  %s32_s22 = int_to_ptr.vmem [resolvable:$true] %s31_s22  ;;  %s22_s24 = int_to_ptr.vmem [resolvable:$true] %s21_s24 }
   0x5   :  { %s558_s27 = scalar_lea.hbm %s801_s1, 128 }
   0x6   :  { %p559_p0 = scmp.ne.s32.totalorder %s801_s1, %s558_s27  ;;  %p562_p1 = scmp.lt.u32.totalorder %s558_s27, %s801_s1 }
   0x8   :  { %p564_p2 = pnand %p562_p1, %p559_p0 }
   0xa   :  { %567 = shalt.err (!%p564_p2)
}
   0xb   :  { %s568_s8 = scalar_lea.vmem %s32_s22, 128  ;;  %p573_p4 = scmp.lt.s32.totalorder %s32_s22, %s32_s22 }
   0xc   :  { %p569_p3 = scmp.ne.s32.totalorder %s32_s22, %s568_s8  ;;  %p574_p5 = scmp.lt.s32.totalorder %s568_s8, %s568_s8 }
   0xe   :  { %p575_p6 = por %p574_p5, %p573_p4 }
  0x10   :  { %p576_p7 = pnand %p575_p6, %p569_p3 }
  0x12   :  { %579 = shalt.err (!%p576_p7)
}
  0x13   :  { %34 = dma.hbm_to_vmem [thread:$0]  %s801_s1, 128, %s32_s22, [#allocation7]  }
  0x14   :  { %s580_s13 = scalar_lea.hbm %s800_s0, 128 }
  0x15   :  { %p581_p8 = scmp.ne.s32.totalorder %s800_s0, %s580_s13  ;;  %p584_p9 = scmp.lt.u32.totalorder %s580_s13, %s800_s0 }
  0x17   :  { %p586_p10 = pnand %p584_p9, %p581_p8 }
  0x19   :  { %589 = shalt.err (!%p586_p10)
}
  0x1a   :  { %s590_s18 = scalar_lea.vmem %s22_s24, 128  ;;  %p595_p12 = scmp.lt.s32.totalorder %s22_s24, %s22_s24 }
  0x1b   :  { %p591_p11 = scmp.ne.s32.totalorder %s22_s24, %s590_s18  ;;  %p596_p13 = scmp.lt.s32.totalorder %s590_s18, %s590_s18 }
  0x1d   :  { %p597_p0 = por %p596_p13, %p595_p12 }
  0x1f   :  { %p598_p1 = pnand %p597_p0, %p591_p11 }
  0x21   :  { %601 = shalt.err (!%p598_p1)
}
  0x22   :  { %24 = dma.hbm_to_vmem [thread:$0]  %s800_s0, 128, %s22_s24, [#allocation4]  }
  0x23   :  { %s678_s20 = smov [#allocation8]   ;;  %s602_s25 = scalar_lea.hbm %s802_s2, 256 }
  0x24   :  { %s40_s21 = sshll.u32 %s678_s20, 4  ;;  %p603_p2 = scmp.ne.s32.totalorder %s802_s2, %s602_s25  ;;  %s41_s21 = int_to_ptr.vmem [resolvable:$true] %s40_s21 }
  0x25   :  { %p606_p3 = scmp.lt.u32.totalorder %s602_s25, %s802_s2 }
  0x27   :  { %p608_p4 = pnand %p606_p3, %p603_p2 }
  0x29   :  { %611 = shalt.err (!%p608_p4)
}
  0x2a   :  { %s612_s30 = scalar_lea.vmem %s41_s21, 256  ;;  %p617_p6 = scmp.lt.s32.totalorder %s41_s21, %s41_s21 }
  0x2b   :  { %p613_p5 = scmp.ne.s32.totalorder %s41_s21, %s612_s30  ;;  %p618_p7 = scmp.lt.s32.totalorder %s612_s30, %s612_s30 }
  0x2d   :  { %p619_p8 = por %p618_p7, %p617_p6 }
  0x2f   :  { %p620_p9 = pnand %p619_p8, %p613_p5 }
  0x31   :  { %623 = shalt.err (!%p620_p9)
}
  0x32   :  { %s679_s0 = smov 128   ;;  %s680_s24 = smov 8  }
  0x33   :  { %46 = dma.hbm_to_vmem [thread:$0]  %s802_s2, 256, %s41_s21, [#allocation7], %s679_s0, %s679_s0, %s680_s24  }
  0x34   :  { %s681_s9 = smov [#allocation9]   ;;  %s624_s13 = scalar_lea.hbm %s803_s3, 6144 }
  0x35   :  { %s52_s10 = sshll.u32 %s681_s9, 4  ;;  %p625_p10 = scmp.ne.s32.totalorder %s803_s3, %s624_s13  ;;  %s53_s10 = int_to_ptr.vmem [resolvable:$true] %s52_s10 }
  0x36   :  { %p628_p11 = scmp.lt.u32.totalorder %s624_s13, %s803_s3 }
  0x38   :  { %p630_p12 = pnand %p628_p11, %p625_p10 }
  0x3a   :  { %633 = shalt.err (!%p630_p12)
}
  0x3b   :  { %s634_s18 = scalar_lea.vmem %s53_s10, 6144  ;;  %p639_p0 = scmp.lt.s32.totalorder %s53_s10, %s53_s10 }
  0x3c   :  { %p635_p13 = scmp.ne.s32.totalorder %s53_s10, %s634_s18  ;;  %p640_p1 = scmp.lt.s32.totalorder %s634_s18, %s634_s18 }
  0x3e   :  { %p641_p2 = por %p640_p1, %p639_p0 }
  0x40   :  { %p642_p3 = pnand %p641_p2, %p635_p13 }
  0x42   :  { %645 = shalt.err (!%p642_p3)
}
  0x43   :  { %s682_s2 = smov 384   ;;  %s683_s1 = smov 24  }
  0x44   :  { %58 = dma.hbm_to_vmem [thread:$0]  %s803_s3, 6144, %s53_s10, [#allocation10], %s682_s2, %s682_s2, %s683_s1  }
  0x45   :  { %668 = dma.done.wait [#allocation4], 128  }
  0x46   :  { %669 = vsyncadd [#allocation4], 4294967168 }
  0x47   :  { %670 = dma.done.wait [#allocation7], 384  }
  0x48   :  { %671 = vsyncadd [#allocation7], 4294966912 }
  0x49   :  { %672 = dma.done.wait [#allocation10], 6144  }
  0x4a   :  { %673 = vsyncadd [#allocation10], 4294961152  ;;  %v684_v0 = vmov 0.0|0.0   ;;  %v685_v1 = vmov 0.0   ;;  %vm686_vm0 = vmmov 0   ;;  %v169_v2 = vld [vmem:[#allocation9 + $0x8] sm:$0xff] }
  0x4b   :  { %477 = vmatprep.subr.bf16.mxu0 %v684_v0  ;;  %80 = vst [vmem:[#allocation2] sm:$0xff] %v685_v1  ;;  %439 = vmatprep.mubr.msk.f32.mxu0 %vm686_vm0, %v685_v1  ;;  %v172_v3 = vld [vmem:[#allocation9 + $0x20] sm:$0xff]  ;;  %v171_v6 = vld [vmem:[#allocation9 + $0x18] sm:$0xff]  ;;  %v178_v8 = vld [vmem:[#allocation9 + $0x50] sm:$0xff]  ;;  %vm81_vm1 = vcmask 261120   ;;  %vm94_vm2 = vcmask 130048  }
  0x4c   :  { %297 = vmatprep.mubr.f32.mxu1 %v685_v1  ;;  %v168_v4 = vld [vmem:[#allocation9] sm:$0xff]  ;;  %v480_v5 = vpack.c.bf16 %v172_v3, %v169_v2  ;;  %v175_v7 = vld [vmem:[#allocation9 + $0x38] sm:$0xff]  ;;  %v174_v11 = vld [vmem:[#allocation9 + $0x30] sm:$0xff]  ;;  %s687_s23 = smov [#allocation11]  }
  0x4d   :  { %v482_v9 = vpack.c.bf16 %v171_v6, %v168_v4  ;;  %v484_v10 = vpack.c.bf16 %v178_v8, %v175_v7  ;;  %v177_v12 = vld [vmem:[#allocation9 + $0x48] sm:$0xff]  ;;  %v184_v14 = vld [vmem:[#allocation9 + $0x80] sm:$0xff]  ;;  %v183_v18 = vld [vmem:[#allocation9 + $0x78] sm:$0xff]  ;;  %s400_s25 = sshll.u32 %s687_s23, 4  ;;  %s401_s25 = int_to_ptr.vmem [resolvable:$true] %s400_s25 }
  0x4e   :  { %v181_v13 = vld [vmem:[#allocation9 + $0x68] sm:$0xff]  ;;  %481 = vmatprep.subr.bf16.mxu1 %v480_v5  ;;  %v486_v15 = vpack.c.bf16 %v177_v12, %v174_v11  ;;  %v180_v17 = vld [vmem:[#allocation9 + $0x60] sm:$0xff]  ;;  %v187_v19 = vld [vmem:[#allocation9 + $0x98] sm:$0xff]  ;;  %s646_s26 = scalar_lea.vmem %s401_s25, 128  ;;  %p651_p5 = scmp.lt.s32.totalorder %s401_s25, %s401_s25 }
  0x4f   :  { %483 = vmatpush1.bf16.msra.mxu1 %v482_v9  ;;  %v488_v16 = vpack.c.bf16 %v184_v14, %v181_v13  ;;  %v190_v20 = vld [vmem:[#allocation9 + $0xb0] sm:$0xff]  ;;  %v490_v21 = vpack.c.bf16 %v183_v18, %v180_v17  ;;  %v86_v23 = vld [vmem:[#allocation8 + $0x8] sm:$0xff]  ;;  %v189_v26 = vld [vmem:[#allocation9 + $0xa8] sm:$0xff]  ;;  %p647_p4 = scmp.ne.s32.totalorder %s401_s25, %s646_s26  ;;  %p652_p6 = scmp.lt.s32.totalorder %s646_s26, %s646_s26 }
  0x50   :  { %485 = vmatprep.subr.bf16.mxu1 %v484_v10  ;;  %v85_v22 = vld [vmem:[#allocation8] sm:$0xff]  ;;  %v492_v24 = vpack.c.bf16 %v190_v20, %v187_v19  ;;  %v79_v28 = vld [vmem:[#allocation6] sm:$0xff]  ;;  %v196_v30 = vld [vmem:[#allocation9 + $0xe0] sm:$0xff]  ;;  %v218_v19 = vlaneseq }
  0x51   :  { %v186_v25 = vld [vmem:[#allocation9 + $0x90] sm:$0xff]  ;;  %v478_v27 = vpack.c.bf16 %v86_v23, %v85_v22  ;;  %v193_v29 = vld [vmem:[#allocation9 + $0xc8] sm:$0xff]  ;;  %82 = vst.msk [vmem:[#allocation2] sm:$0xff] %vm81_vm1, %v79_v28  ;;  %v84_v32 = vld [vmem:[#allocation3] sm:$0xff]  ;;  %p653_p7 = por %p652_p6, %p651_p5 }
  0x52   :  { %v170_v31 = vld [vmem:[#allocation9 + $0x10] sm:$0xff]  ;;  %v173_v33 = vld [vmem:[#allocation9 + $0x28] sm:$0xff]  ;;  %v494_v34 = vpack.c.bf16 %v189_v26, %v186_v25  ;;  %v176_v36 = vld [vmem:[#allocation9 + $0x40] sm:$0xff]  ;;  %v496_v37 = vpack.c.bf16 %v196_v30, %v193_v29  ;;  %v219_v20 = vshrl.u32 %v218_v19, 7 }
  0x53   :  { %487 = vmatpush1.bf16.msra.mxu1 %v486_v15  ;;  %479 = vmatpush3.bf16.msra.mxu0 %v478_v27  ;;  %v513_v35 = vpack.c.bf16 %v173_v33, %v170_v31  ;;  %v192_v38 = vld [vmem:[#allocation9 + $0xc0] sm:$0xff]  ;;  %v195_v39 = vld [vmem:[#allocation9 + $0xd8] sm:$0xff]  ;;  %v202_v42 = vld [vmem:[#allocation9 + $0x110] sm:$0xff]  ;;  %p654_p8 = pnand %p653_p7, %p647_p4 }
  0x54   :  { %489 = vmatprep.subr.bf16.mxu1 %v488_v16  ;;  %512 = vmatprep.subr.bf16.mxu0 %v684_v0  ;;  %v179_v40 = vld [vmem:[#allocation9 + $0x58] sm:$0xff]  ;;  %v498_v44 = vpack.c.bf16 %v195_v39, %v192_v38  ;;  %v182_v45 = vld [vmem:[#allocation9 + $0x70] sm:$0xff]  ;;  %v185_v46 = vld [vmem:[#allocation9 + $0x88] sm:$0xff]  ;;  %v224_v26 = vsub.s32 1, %v219_v20 }
  0x55   :  { %v199_v41 = vld [vmem:[#allocation9 + $0xf8] sm:$0xff]  ;;  %v516_v43 = vpack.c.bf16 %v179_v40, %v176_v36  ;;  %v198_v48 = vld [vmem:[#allocation9 + $0xf0] sm:$0xff]  ;;  %v201_v49 = vld [vmem:[#allocation9 + $0x108] sm:$0xff]  ;;  %v519_v52 = vpack.c.bf16 %v185_v46, %v182_v45 }
  0x56   :  { %440 = vmatmul.mubr.msk.f32.vlgmr.msra.gmra.mrb[0].mxu0 %vm94_vm2, %v84_v32  ;;  %v500_v47 = vpack.c.bf16 %v202_v42, %v199_v41  ;;  %v205_v50 = vld [vmem:[#allocation9 + $0x128] sm:$0xff]  ;;  %v208_v51 = vld [vmem:[#allocation9 + $0x140] sm:$0xff]  ;;  %v502_v53 = vpack.c.bf16 %v201_v49, %v198_v48  ;;  %v191_v55 = vld [vmem:[#allocation9 + $0xb8] sm:$0xff] }
  0x57   :  { %491 = vmatpush1.bf16.msra.mxu1 %v490_v21  ;;  %514 = vmatpush3.bf16.msra.mxu0 %v513_v35  ;;  %v188_v54 = vld [vmem:[#allocation9 + $0xa0] sm:$0xff]  ;;  %v504_v56 = vpack.c.bf16 %v208_v51, %v205_v50  ;;  %v207_v58 = vld [vmem:[#allocation9 + $0x138] sm:$0xff]  ;;  %v214_v60 = vld [vmem:[#allocation9 + $0x170] sm:$0xff]  ;;  %v220_v21 = vsub.s32 0, %v219_v20  ;;  %v228_v35 = vsub.s32 2, %v219_v20 }
  0x58   :  { %493 = vmatprep.subr.bf16.mxu1 %v492_v24  ;;  %474 = vmatprep.mubr.msk.f32.mxu0 %vm686_vm0, %v685_v1  ;;  %v204_v57 = vld [vmem:[#allocation9 + $0x120] sm:$0xff]  ;;  %v211_v59 = vld [vmem:[#allocation9 + $0x158] sm:$0xff]  ;;  %v522_v61 = vpack.c.bf16 %v191_v55, %v188_v54  ;;  %v194_v63 = vld [vmem:[#allocation9 + $0xd0] sm:$0xff] }
  0x59   :  { %515 = vmatprep.subr.bf16.mxu0 %v684_v0  ;;  %v506_v62 = vpack.c.bf16 %v207_v58, %v204_v57  ;;  %v197_v1 = vld [vmem:[#allocation9 + $0xe8] sm:$0xff]  ;;  %v508_v2 = vpack.c.bf16 %v214_v60, %v211_v59  ;;  %v210_v3 = vld [vmem:[#allocation9 + $0x150] sm:$0xff]  ;;  %v200_v7 = vld [vmem:[#allocation9 + $0x100] sm:$0xff] }
  0x5a   :  { %v213_v4 = vld [vmem:[#allocation9 + $0x168] sm:$0xff]  ;;  %v525_v5 = vpack.c.bf16 %v197_v1, %v194_v63  ;;  %v203_v8 = vld [vmem:[#allocation9 + $0x118] sm:$0xff]  ;;  %v206_v11 = vld [vmem:[#allocation9 + $0x130] sm:$0xff] }
  0x5b   :  { %495 = vmatpush1.bf16.msra.mxu1 %v494_v34  ;;  %517 = vmatpush3.bf16.msra.mxu0 %v516_v43  ;;  %v510_v6 = vpack.c.bf16 %v213_v4, %v210_v3  ;;  %v528_v9 = vpack.c.bf16 %v203_v8, %v200_v7  ;;  %v83_v10 = vld [vmem:[#allocation2] sm:$0xff]  ;;  %v209_v12 = vld [vmem:[#allocation9 + $0x148] sm:$0xff]  ;;  %v212_v14 = vld [vmem:[#allocation9 + $0x160] sm:$0xff] }
  0x5c   :  { %497 = vmatprep.subr.bf16.mxu1 %v496_v37  ;;  %518 = vmatprep.subr.bf16.mxu0 %v684_v0  ;;  %v531_v13 = vpack.c.bf16 %v209_v12, %v206_v11  ;;  %v215_v15 = vld [vmem:[#allocation9 + $0x178] sm:$0xff] }
  0x5d   :  { %v534_v16 = vpack.c.bf16 %v215_v15, %v212_v14  ;;  %v216_v22 = vld [vmem:[%s805_s5] sm:$0x7] }
  0x5e   :  { %v221_v23 = vrot.slane %v216_v22, %v220_v21  ;;  %v225_v29 = vrot.slane %v216_v22, %v224_v26  ;;  %v229_v36 = vrot.slane %v216_v22, %v228_v35  ;;  %v411_v38 = vld [vmem:[%s804_s4] ss:$0 sm:$0xff] }
  0x5f   :  { %499 = vmatpush1.bf16.msra.mxu1 %v498_v44  ;;  %520 = vmatpush3.bf16.msra.mxu0 %v519_v52 }
  0x60   :  { %501 = vmatprep.subr.bf16.mxu1 %v500_v47  ;;  %521 = vmatprep.subr.bf16.mxu0 %v684_v0 }
  0x63   :  { %503 = vmatpush1.bf16.msra.mxu1 %v502_v53  ;;  %523 = vmatpush3.bf16.msra.mxu0 %v522_v61 }
  0x64   :  { %505 = vmatprep.subr.bf16.mxu1 %v504_v56  ;;  %524 = vmatprep.subr.bf16.mxu0 %v684_v0 }
  0x67   :  { %507 = vmatpush1.bf16.msra.mxu1 %v506_v62  ;;  %526 = vmatpush3.bf16.msra.mxu0 %v525_v5 }
  0x68   :  { %509 = vmatprep.subr.bf16.mxu1 %v508_v2  ;;  %527 = vmatprep.subr.bf16.mxu0 %v684_v0 }
  0x6b   :  { %511 = vmatpush1.bf16.msra.mxu1 %v510_v6  ;;  %529 = vmatpush3.bf16.msra.mxu0 %v528_v9 }
  0x6c   :  { %530 = vmatprep.subr.bf16.mxu0 %v684_v0 }
  0x6e   :  { %298 = vmatmul.mubr.f32.vlgmr.msra.gmra.mrb[0].mxu1 %v83_v10 }
  0x6f   :  { %532 = vmatpush3.bf16.msra.mxu0 %v531_v13 }
  0x70   :  { %533 = vmatprep.subr.bf16.mxu0 %v684_v0 }
  0x73   :  { %535 = vmatpush3.bf16.msra.mxu0 %v534_v16 }
  0x76   :  { %475 = vmatmul.mubr.f32.vlgmr.msra.gmra.mrb[2].mxu0 %v83_v10 }
 0x129   :  { %v164_v17 = vpop.f32.mrb[0].mxu0 }
 0x12a   :  { %v441_v18 = vpop.f32.mrb[1].mxu0  ;;  %v165_v41 = vadd.f32 %v411_v38, %v164_v17 }
 0x141   :  { %v299_v24 = vpop.f32.mrb[0].mxu1 }
 0x142   :  { %v300_v25 = vadd.f32 %v299_v24, %v221_v23  ;;  %v301_v27 = vpop.f32.mrb[1].mxu1 }
 0x143   :  { %v302_v0 = vadd.f32 %v301_v27, %v225_v29 }
 0x144   :  { %v413_v28 = vmul.f32 -1.442695, %v300_v25 }
 0x145   :  { %v414_v32 = vmul.f32 -1.442695, %v302_v0 }
 0x146   :  { %548 = vpow2.f32 %v413_v28 }
 0x147   :  { %550 = vpow2.f32 %v414_v32 }
 0x149   :  { %v370_v30 = vpop.f32.mrb[2].mxu0 }
 0x14a   :  { %v476_v31 = vpop.f32.mrb[3].mxu0  ;;  %v371_v37 = vadd.f32 %v370_v30, %v229_v36 }
 0x150   :  { %v549_v33 = vpop.eup %548 }
 0x151   :  { %v377_v34 = vadd.f32 1.0, %v549_v33  ;;  %v551_v39 = vpop.eup %550 }
 0x152   :  { %v383_v43 = vadd.f32 1.0, %v551_v39 }
 0x153   :  { %552 = vrcp.f32 %v377_v34 }
 0x15d   :  { %v553_v40 = vpop.eup %552 }
 0x15e   :  { %v386_v42 = vmul.f32 %v553_v40, %v371_v37 }
 0x160   :  { %v387_v44 = vadd.f32 %v386_v42, %v165_v41 }
 0x162   :  { %554 = vtanh.f32 %v387_v44 }
 0x163   :  { %556 = vrcp.f32 %v383_v43 }
 0x16c   :  { %v555_v45 = vpop.eup %554 }
 0x16d   :  { %v389_v46 = vsub.f32 %v83_v10, %v555_v45  ;;  %v557_v47 = vpop.eup %556 }
 0x16f   :  { %v390_v48 = vmul.f32 %v557_v47, %v389_v46 }
 0x171   :  { %v391_v49 = vadd.f32 %v555_v45, %v390_v48 }
 0x173   :  { %392 = vst [vmem:[#allocation2] sm:$0xff] %v391_v49  ;;  %393 = vst [vmem:[#allocation11] sm:$0xff] %v391_v49 }
 0x174   :  { %657 = shalt.err (!%p654_p8)
}
 0x175   :  { %s658_s28 = scalar_lea.hbm %s806_s6, 128 }
 0x176   :  { %p659_p9 = scmp.ne.s32.totalorder %s806_s6, %s658_s28  ;;  %p662_p10 = scmp.lt.u32.totalorder %s658_s28, %s806_s6 }
 0x178   :  { %p664_p11 = pnand %p662_p10, %p659_p9 }
 0x17a   :  { %667 = shalt.err (!%p664_p11)
}
 0x17b   :  { %403 = dma.vmem_to_hbm [thread:$0]  %s401_s25, 128, %s806_s6, [#allocation5]  }
 0x17c   :  { %674 = dma.done.wait [#allocation5], 128  }
 0x17d   :  { %675 = vsyncadd [#allocation5], 4294967168 }
 0x17e   :  { %407 = vsyncpa [#allocation4], 1 }
 0x17f   :  { %408 = vsyncpa [#allocation7], 1 }
 0x180   :  { %409 = vsyncpa [#allocation10], 1 }
 0x181   :  { %410 = vsyncpa [#allocation5], 1 }

</bundles_post_ra>
